<compile_context>
chip_gen: v5e
topology: v5e:2x2
jax: 0.10.0
libtpu: 0.0.40
codegen_flags: <defaults>
</compile_context>

<pallas_src>
import functools

import jax
import jax.numpy as jnp
from jax.experimental import pallas as pl
from jax.experimental.pallas import tpu as pltpu


_SQRT_2_OVER_PI = 0.7978845608028654  # sqrt(2/pi)


def _gelu_tanh(x):
    # GELU with tanh approximation, matching torch.nn.GELU(approximate='tanh').
    return 0.5 * x * (1.0 + jnp.tanh(_SQRT_2_OVER_PI * (x + 0.044715 * x * x * x)))


def mlp_kernel(x_ref, w1_ref, b1_ref, w2_ref, b2_ref, o_ref):
    # x_ref:  (tm, C)   token-row tile (compute dtype, e.g. bf16)
    # w1_ref: (C, H)    c_fc weight (transposed vs torch), resident
    # b1_ref: (1, H)    c_fc bias (f32)
    # w2_ref: (H, C)    c_proj weight (transposed vs torch), resident
    # b2_ref: (1, C)    c_proj bias (f32)
    # o_ref:  (tm, C)   output tile (x dtype)
    x = x_ref[...]
    # c_fc: MXU matmul with f32 accumulation, bias + GELU in f32.
    h = jnp.dot(x, w1_ref[...], preferred_element_type=jnp.float32) + b1_ref[...]
    h = _gelu_tanh(h)
    # c_proj: cast activations back to the MXU input dtype, accumulate in f32.
    y = jnp.dot(h.astype(w2_ref.dtype), w2_ref[...],
                preferred_element_type=jnp.float32) + b2_ref[...]
    o_ref[...] = y.astype(o_ref.dtype)


def _round_up(n, m):
    return ((n + m - 1) // m) * m


@functools.partial(jax.jit, static_argnames=("tm", "compute_dtype"))
def mlp_forward(x, w1, b1, w2, b2, *, tm=512, compute_dtype=jnp.bfloat16):
    """Fused GPT-2 MLP forward. x: (B, T, C); w1: (C, H); w2: (H, C)."""
    B, T, C = x.shape
    H = w1.shape[1]
    M = B * T

    # Row tile: multiple of 8 (sublane granule), never larger than padded M.
    tm_eff = min(tm, _round_up(M, 8))
    tm_eff = _round_up(tm_eff, 8)
    Mp = _round_up(M, tm_eff)

    x2d = x.reshape(M, C).astype(compute_dtype)
    if Mp != M:
        x2d = jnp.pad(x2d, ((0, Mp - M), (0, 0)))

    w1c = w1.astype(compute_dtype)
    w2c = w2.astype(compute_dtype)
    b1_2d = b1.reshape(1, H).astype(jnp.float32)
    b2_2d = b2.reshape(1, C).astype(jnp.float32)

    cbytes = jnp.dtype(compute_dtype).itemsize
    obytes = jnp.dtype(x.dtype).itemsize
    vmem_needed = (
        2 * C * H * cbytes            # resident weights, single-buffered
        + (H + C) * 4                 # biases (f32)
        + 2 * tm_eff * C * cbytes     # x tile, double-buffered
        + 2 * tm_eff * C * obytes     # out tile, double-buffered
        + tm_eff * H * (4 + cbytes)   # f32 intermediate h + cast copy
        + tm_eff * C * 4              # f32 second-matmul result
    )
    vmem_limit = int(vmem_needed * 1.5) + (8 << 20)  # headroom for compiler scratch

    out2d = pl.pallas_call(
        mlp_kernel,
        out_shape=jax.ShapeDtypeStruct((Mp, C), x.dtype),
        grid_spec=pltpu.PrefetchScalarGridSpec(
            num_scalar_prefetch=0,
            grid=(Mp // tm_eff,),
            in_specs=[
                pl.BlockSpec((tm_eff, C), lambda i: (i, 0)),           # x tile
                pl.BlockSpec((C, H), lambda i: (0, 0),
                             pipeline_mode=pl.Buffered(1)),            # W1 resident
                pl.BlockSpec((1, H), lambda i: (0, 0),
                             pipeline_mode=pl.Buffered(1)),            # b1
                pl.BlockSpec((H, C), lambda i: (0, 0),
                             pipeline_mode=pl.Buffered(1)),            # W2 resident
                pl.BlockSpec((1, C), lambda i: (0, 0),
                             pipeline_mode=pl.Buffered(1)),            # b2
            ],
            out_specs=pl.BlockSpec((tm_eff, C), lambda i: (i, 0)),
        ),
        compiler_params=pltpu.CompilerParams(
            dimension_semantics=("parallel",),   # shards row tiles across TCs (v7x)
            vmem_limit_bytes=vmem_limit,
        ),
    )(x2d, w1c, b1_2d, w2c, b2_2d)

    if Mp != M:
        out2d = out2d[:M]
    return out2d.reshape(B, T, C)


def _reference(x, w1, b1, w2, b2):
    # Pure-JAX f32 reference of the same semantics.
    B, T, C = x.shape
    h = jnp.dot(x.reshape(-1, C), w1) + b1
    h = _gelu_tanh(h)
    y = jnp.dot(h, w2) + b2
    return y.reshape(B, T, C)


def _make_params(key, C, H):
    kw1, kw2 = jax.random.split(key)
    # Deterministic nanoGPT-style init (std=0.02); weights stored (in, out).
    w1 = 0.02 * jax.random.normal(kw1, (C, H), dtype=jnp.float32)
    b1 = jnp.zeros((H,), dtype=jnp.float32)
    w2 = 0.02 * jax.random.normal(kw2, (H, C), dtype=jnp.float32)
    b2 = jnp.zeros((C,), dtype=jnp.float32)
    return w1, b1, w2, b2


if __name__ == "__main__":
    key = jax.random.PRNGKey(0)
    k_small, k_big, k_params1, k_params2 = jax.random.split(key, 4)

    # --- 1) Small GPT-2-ish config, f32 compute path: tight check. -----------
    B, T, C = 2, 8, 32
    H = 4 * C
    x = jax.random.normal(k_small, (B, T, C), dtype=jnp.float32)
    w1, b1, w2, b2 = _make_params(k_params1, C, H)

    out_f32 = mlp_forward(x, w1, b1, w2, b2, compute_dtype=jnp.float32)
    jax.block_until_ready(out_f32)
    ref = _reference(x, w1, b1, w2, b2)
    assert jnp.allclose(out_f32, ref, atol=1e-5, rtol=1e-5), "f32 path mismatch"

    # --- 2) Same shapes, default bf16 MXU path: loose check. -----------------
    out_bf16 = mlp_forward(x, w1, b1, w2, b2)
    jax.block_until_ready(out_bf16)
    assert jnp.allclose(out_bf16, ref, atol=5e-3, rtol=5e-2), "bf16 path mismatch"

    # --- 3) Non-divisible token count + multi-step grid (padding exercised). --
    B2, T2, C2 = 2, 130, 64
    H2 = 4 * C2
    x2 = jax.random.normal(k_big, (B2, T2, C2), dtype=jnp.float32)
    w1b, b1b, w2b, b2b = _make_params(k_params2, C2, H2)

    out2 = mlp_forward(x2, w1b, b1b, w2b, b2b, tm=128)  # M=260 -> pad to 384, grid=3
    jax.block_until_ready(out2)
    ref2 = _reference(x2, w1b, b1b, w2b, b2b)
    assert jnp.allclose(out2, ref2, atol=5e-3, rtol=5e-2), "padded/bf16 path mismatch"

    print("KERNEL_OK")
</pallas_src>

<mosaic_0001>
module attributes {stable_mosaic.version = 11 : i64} {
  func.func @mlp_kernel(%arg0: i32, %arg1: memref<16x32xf32, #tpu.memory_space<vmem>>, %arg2: memref<32x128xf32, #tpu.memory_space<vmem>>, %arg3: memref<1x128xf32, #tpu.memory_space<vmem>>, %arg4: memref<128x32xf32, #tpu.memory_space<vmem>>, %arg5: memref<1x32xf32, #tpu.memory_space<vmem>>, %arg6: memref<16x32xf32, #tpu.memory_space<vmem>>) attributes {dimension_semantics = [#tpu.dimension_semantics<parallel>], iteration_bounds = array<i64: 1>, scalar_prefetch = 0 : i64, scratch_operands = 0 : i64, tpu.core_type = #tpu.core_type<tc>, window_params = [{transform_indices = @transform_0, window_bounds = array<i64: 16, 32>}, {pipeline_mode = #tpu.pipeline_mode<synchronous>, transform_indices = @transform_1, window_bounds = array<i64: 32, 128>}, {pipeline_mode = #tpu.pipeline_mode<synchronous>, transform_indices = @transform_2, window_bounds = array<i64: 1, 128>}, {pipeline_mode = #tpu.pipeline_mode<synchronous>, transform_indices = @transform_3, window_bounds = array<i64: 128, 32>}, {pipeline_mode = #tpu.pipeline_mode<synchronous>, transform_indices = @transform_4, window_bounds = array<i64: 1, 32>}, {transform_indices = @transform_5, window_bounds = array<i64: 16, 32>}]} {
    %c0 = arith.constant 0 : index
    %c0_0 = arith.constant 0 : index
    %0 = vector.load %arg1[%c0, %c0_0] : memref<16x32xf32, #tpu.memory_space<vmem>>, vector<16x32xf32>
    %c0_1 = arith.constant 0 : index
    %c0_2 = arith.constant 0 : index
    %1 = vector.load %arg2[%c0_1, %c0_2] : memref<32x128xf32, #tpu.memory_space<vmem>>, vector<32x128xf32>
    %cst = arith.constant dense<0.000000e+00> : vector<16x128xf32>
    %2 = tpu.matmul %0, %1, %cst {dimension_numbers = #tpu.dot_dimension_numbers<[1], [0], [0], [1], [0, 0, 1, 1], [], []>} : vector<16x32xf32>, vector<32x128xf32>, vector<16x128xf32> -> vector<16x128xf32>
    %c0_3 = arith.constant 0 : index
    %c0_4 = arith.constant 0 : index
    %3 = vector.load %arg3[%c0_3, %c0_4] : memref<1x128xf32, #tpu.memory_space<vmem>>, vector<1x128xf32>
    %4 = vector.broadcast %3 : vector<1x128xf32> to vector<16x128xf32>
    %5 = arith.addf %2, %4 : vector<16x128xf32>
    %cst_5 = arith.constant 5.000000e-01 : f32
    %6 = vector.broadcast %cst_5 : f32 to vector<16x128xf32>
    %7 = arith.mulf %6, %5 : vector<16x128xf32>
    %cst_6 = arith.constant 4.471500e-02 : f32
    %8 = vector.broadcast %cst_6 : f32 to vector<16x128xf32>
    %9 = arith.mulf %8, %5 : vector<16x128xf32>
    %10 = arith.mulf %9, %5 : vector<16x128xf32>
    %11 = arith.mulf %10, %5 : vector<16x128xf32>
    %12 = arith.addf %5, %11 : vector<16x128xf32>
    %cst_7 = arith.constant 0.797884583 : f32
    %13 = vector.broadcast %cst_7 : f32 to vector<16x128xf32>
    %14 = arith.mulf %13, %12 : vector<16x128xf32>
    %15 = math.tanh %14 : vector<16x128xf32>
    %cst_8 = arith.constant 1.000000e+00 : f32
    %16 = vector.broadcast %cst_8 : f32 to vector<16x128xf32>
    %17 = arith.addf %16, %15 : vector<16x128xf32>
    %18 = arith.mulf %7, %17 : vector<16x128xf32>
    %c0_9 = arith.constant 0 : index
    %c0_10 = arith.constant 0 : index
    %19 = vector.load %arg4[%c0_9, %c0_10] : memref<128x32xf32, #tpu.memory_space<vmem>>, vector<128x32xf32>
    %cst_11 = arith.constant dense<0.000000e+00> : vector<16x32xf32>
    %20 = tpu.matmul %18, %19, %cst_11 {dimension_numbers = #tpu.dot_dimension_numbers<[1], [0], [0], [1], [0, 0, 1, 1], [], []>} : vector<16x128xf32>, vector<128x32xf32>, vector<16x32xf32> -> vector<16x32xf32>
    %c0_12 = arith.constant 0 : index
    %c0_13 = arith.constant 0 : index
    %21 = vector.load %arg5[%c0_12, %c0_13] : memref<1x32xf32, #tpu.memory_space<vmem>>, vector<1x32xf32>
    %22 = vector.broadcast %21 : vector<1x32xf32> to vector<16x32xf32>
    %23 = arith.addf %20, %22 : vector<16x32xf32>
    %c0_14 = arith.constant 0 : index
    %c0_15 = arith.constant 0 : index
    %24 = vector.load %arg6[%c0_14, %c0_15] : memref<16x32xf32, #tpu.memory_space<vmem>>, vector<16x32xf32>
    tpu.vector_store %arg6[%c0_14, %c0_15], %23 {strides = array<i32>} : memref<16x32xf32, #tpu.memory_space<vmem>>, vector<16x32xf32>,
    return
  }
  func.func @transform_0(%arg0: i32) -> (i32, i32) {
    %c0_i32 = arith.constant 0 : i32
    %c0_i32_0 = arith.constant 0 : i32
    return %arg0, %c0_i32 : i32, i32
  }
  func.func @transform_1(%arg0: i32) -> (i32, i32) {
    %c0_i32 = arith.constant 0 : i32
    %c0_i32_0 = arith.constant 0 : i32
    %c0_i32_1 = arith.constant 0 : i32
    return %c0_i32, %c0_i32_0 : i32, i32
  }
  func.func @transform_2(%arg0: i32) -> (i32, i32) {
    %c0_i32 = arith.constant 0 : i32
    %c0_i32_0 = arith.constant 0 : i32
    %c0_i32_1 = arith.constant 0 : i32
    return %c0_i32, %c0_i32_0 : i32, i32
  }
  func.func @transform_3(%arg0: i32) -> (i32, i32) {
    %c0_i32 = arith.constant 0 : i32
    %c0_i32_0 = arith.constant 0 : i32
    %c0_i32_1 = arith.constant 0 : i32
    return %c0_i32, %c0_i32_0 : i32, i32
  }
  func.func @transform_4(%arg0: i32) -> (i32, i32) {
    %c0_i32 = arith.constant 0 : i32
    %c0_i32_0 = arith.constant 0 : i32
    %c0_i32_1 = arith.constant 0 : i32
    return %c0_i32, %c0_i32_0 : i32, i32
  }
  func.func @transform_5(%arg0: i32) -> (i32, i32) {
    %c0_i32 = arith.constant 0 : i32
    %c0_i32_0 = arith.constant 0 : i32
    return %arg0, %c0_i32 : i32, i32
  }
}

</mosaic_0001>

<bundles_post_ra>
// kernel: mlp_forward.1
= control target key start
LH: loop header
LB: loop body
LE: loop exit
PB: predicated region body
PF: predicated region fallthrough
CT: control target
= control target key end

     0   :  { %s307_s0 = inlined_call_operand.vmem [shape: f32[16,32], index: 0, kind: input, shape index: {}]   ;;  %s308_s1 = inlined_call_operand.vmem [shape: f32[32,128], index: 1, kind: input, shape index: {}]   ;;  %s309_s2 = inlined_call_operand.vmem [shape: f32[1,128], index: 2, kind: input, shape index: {}]   ;;  %s310_s3 = inlined_call_operand.vmem [shape: f32[128,32], index: 3, kind: input, shape index: {}]   ;;  %s311_s4 = inlined_call_operand.vmem [shape: f32[1,32], index: 4, kind: input, shape index: {}]   ;;  %s312_s5 = inlined_call_operand.hbm [shape: f32[16,32], index: 5, kind: output, shape index: {}]  }
   0x1   :  { %v26_v0 = vld [vmem:[%s308_s1 + $0x18] sm:$0xff]  ;;  %v25_v1 = vld [vmem:[%s308_s1 + $0x10] sm:$0xff]  ;;  %v24_v2 = vld [vmem:[%s308_s1 + $0x8] sm:$0xff] }
   0x2   :  { %50 = vmatpush.msra.mxu0 %v26_v0  ;;  %v94_v3 = vld [vmem:[%s310_s3 + $0x78] sm:$0xff]  ;;  %v93_v4 = vld [vmem:[%s310_s3 + $0x70] sm:$0xff]  ;;  %v23_v5 = vld [vmem:[%s308_s1] sm:$0xff] }
   0x3   :  { %99 = vmatpush.msra.mxu1 %v94_v3  ;;  %v92_v6 = vld [vmem:[%s310_s3 + $0x68] sm:$0xff]  ;;  %144 = vmatpush.msra.mxu2 %v94_v3 }
   0x4   :  { %51 = vmatpush.msra.mxu0 %v25_v1 }
   0x5   :  { %10 = vsyncpa [#allocation3], 0  ;;  %v21_v7 = vld [vmem:[%s307_s0] sm:$0xff]  ;;  %vm31_vm0 = vcmask 261120   ;;  %100 = vmatpush.msra.mxu1 %v93_v4  ;;  %145 = vmatpush.msra.mxu2 %v93_v4  ;;  %v22_v9 = vld [vmem:[%s307_s0 + $0x8] sm:$0xff]  ;;  %s195_s11 = smov [#allocation2]  }
   0x6   :  { %52 = vmatpush.msra.mxu0 %v24_v2  ;;  %v91_v8 = vld [vmem:[%s310_s3 + $0x60] sm:$0xff]  ;;  %v90_v10 = vld [vmem:[%s310_s3 + $0x58] sm:$0xff]  ;;  %v89_v11 = vld [vmem:[%s310_s3 + $0x50] sm:$0xff]  ;;  %s128_s12 = sshll.u32 %s195_s11, 4  ;;  %s130_s15 = sshll.u32 %s312_s5, 4  ;;  %s129_s12 = int_to_ptr.vmem [resolvable:$true] %s128_s12  ;;  %s131_s15 = int_to_ptr.hbm [resolvable:$true] %s130_s15 }
   0x7   :  { %101 = vmatpush.msra.mxu1 %v92_v6  ;;  %146 = vmatpush.msra.mxu2 %v92_v6  ;;  %v88_v12 = vld [vmem:[%s310_s3 + $0x48] sm:$0xff]  ;;  %v87_v13 = vld [vmem:[%s310_s3 + $0x40] sm:$0xff]  ;;  %v86_v14 = vld [vmem:[%s310_s3 + $0x38] sm:$0xff]  ;;  %s196_s16 = smov 128   ;;  %s197_s17 = smov 8  }
   0x8   :  { %53 = vmatpush.msra.mxu0 %v23_v5  ;;  %v85_v15 = vld [vmem:[%s310_s3 + $0x30] sm:$0xff]  ;;  %v84_v16 = vld [vmem:[%s310_s3 + $0x28] sm:$0xff]  ;;  %v83_v17 = vld [vmem:[%s310_s3 + $0x20] sm:$0xff] }
   0x9   :  { %142 = vmatmul.msk.f32.vlgmr.msra.gmra.mxu0 %vm31_vm0, %v21_v7  ;;  %102 = vmatpush.msra.mxu1 %v91_v8  ;;  %v82_v18 = vld [vmem:[%s310_s3 + $0x18] sm:$0xff]  ;;  %v81_v19 = vld [vmem:[%s310_s3 + $0x10] sm:$0xff]  ;;  %v80_v20 = vld [vmem:[%s310_s3 + $0x8] sm:$0xff] }
   0xa   :  { %147 = vmatpush.msra.mxu2 %v91_v8  ;;  %v79_v21 = vld [vmem:[%s310_s3] sm:$0xff] }
   0xb   :  { %103 = vmatpush.msra.mxu1 %v90_v10  ;;  %v163_v22 = vld [vmem:[%s309_s2] ss:$0 sm:$0xff] }
   0xc   :  { %148 = vmatpush.msra.mxu2 %v90_v10  ;;  %v164_v45 = vld [vmem:[%s311_s4] ss:$0 sm:$0xff] }
   0xd   :  { %104 = vmatpush.msra.mxu1 %v89_v11 }
   0xe   :  { %149 = vmatpush.msra.mxu2 %v89_v11 }
   0xf   :  { %105 = vmatpush.msra.mxu1 %v88_v12 }
  0x10   :  { %150 = vmatpush.msra.mxu2 %v88_v12 }
  0x11   :  { %143 = vmatmul.msk.f32.gmra.mxu0 %vm31_vm0, %v22_v9  ;;  %106 = vmatpush.msra.mxu1 %v87_v13 }
  0x12   :  { %151 = vmatpush.msra.mxu2 %v87_v13 }
  0x13   :  { %107 = vmatpush.msra.mxu1 %v86_v14 }
  0x14   :  { %152 = vmatpush.msra.mxu2 %v86_v14 }
  0x15   :  { %108 = vmatpush.msra.mxu1 %v85_v15 }
  0x16   :  { %153 = vmatpush.msra.mxu2 %v85_v15 }
  0x17   :  { %109 = vmatpush.msra.mxu1 %v84_v16 }
  0x18   :  { %154 = vmatpush.msra.mxu2 %v84_v16 }
  0x19   :  { %110 = vmatpush.msra.mxu1 %v83_v17 }
  0x1a   :  { %155 = vmatpush.msra.mxu2 %v83_v17 }
  0x1b   :  { %111 = vmatpush.msra.mxu1 %v82_v18 }
  0x1c   :  { %156 = vmatpush.msra.mxu2 %v82_v18 }
  0x1d   :  { %112 = vmatpush.msra.mxu1 %v81_v19 }
  0x1e   :  { %157 = vmatpush.msra.mxu2 %v81_v19 }
  0x1f   :  { %113 = vmatpush.msra.mxu1 %v80_v20 }
  0x20   :  { %158 = vmatpush.msra.mxu2 %v80_v20 }
  0x21   :  { %114 = vmatpush.msra.mxu1 %v79_v21 }
  0x22   :  { %159 = vmatpush.msra.mxu2 %v79_v21 }
  0x86   :  { %v55_v23 = vpop.f32.mrf.mxu0 }
  0x87   :  { %v56_v24 = vadd.f32 %v163_v22, %v55_v23 }
  0x89   :  { %v63_v25 = vmul.f32 0.044715, %v56_v24  ;;  %v61_v38 = vmul.f32 0.5, %v56_v24 }
  0x8b   :  { %v65_v26 = vmul.f32 %v63_v25, %v56_v24 }
  0x8d   :  { %v67_v27 = vmul.f32 %v65_v26, %v56_v24 }
  0x8e   :  { %v58_v28 = vpop.f32.mrf.mxu0 }
  0x8f   :  { %v59_v29 = vadd.f32 %v163_v22, %v58_v28  ;;  %v69_v30 = vadd.f32 %v67_v27, %v56_v24 }
  0x91   :  { %v71_v31 = vmul.f32 0.7978846, %v69_v30  ;;  %v64_v32 = vmul.f32 0.044715, %v59_v29  ;;  %v62_v42 = vmul.f32 0.5, %v59_v29 }
  0x93   :  { %165 = vtanh.f32 %v71_v31  ;;  %v66_v33 = vmul.f32 %v64_v32, %v59_v29 }
  0x95   :  { %v68_v34 = vmul.f32 %v66_v33, %v59_v29 }
  0x97   :  { %v70_v35 = vadd.f32 %v68_v34, %v59_v29 }
  0x99   :  { %v166_v36 = vpop.eup %165  ;;  %v72_v37 = vmul.f32 0.7978846, %v70_v35 }
  0x9a   :  { %v75_v39 = vadd.f32 1.0, %v166_v36 }
  0x9b   :  { %167 = vtanh.f32 %v72_v37 }
  0x9c   :  { %v77_v40 = vmul.f32 %v75_v39, %v61_v38 }
  0x9e   :  { %115 = vmatmul.f32.vlgmr.msra.gmra.mxu1 %v77_v40 }
  0xa1   :  { %v168_v41 = vpop.eup %167 }
  0xa2   :  { %v76_v43 = vadd.f32 1.0, %v168_v41 }
  0xa4   :  { %v78_v44 = vmul.f32 %v76_v43, %v62_v42 }
  0xa6   :  { %118 = vmatmul.f32.vlgmr.msra.gmra.mxu2 %v78_v44 }
 0x11b   :  { %v116_v46 = vpop.f32.mrf.mxu1 }
 0x11c   :  { %v117_v47 = vadd.f32 %v164_v45, %v116_v46 }
 0x11e   :  { %122 = vst.msk [vmem:[#allocation2] sm:$0xff] %vm31_vm0, %v117_v47 }
 0x129   :  { %v119_v48 = vpop.f32.mrf.mxu2 }
 0x12a   :  { %v120_v49 = vadd.f32 %v164_v45, %v119_v48 }
 0x12c   :  { %123 = vst.msk [vmem:[#allocation2 + $0x8] sm:$0xff] %vm31_vm0, %v120_v49 }
 0x12d   :  { %136 = dma.vmem_to_hbm [thread:$0]  %s129_s12, 256, %s131_s15, [#allocation3], %s196_s16, %s196_s16, %s197_s17  }
 0x12e   :  { %193 = dma.done.wait [#allocation3], 256  }
 0x12f   :  { %194 = vsyncadd [#allocation3], 4294967040 }
 0x130   :  { %141 = vsyncpa [#allocation3], 1 }

</bundles_post_ra>
